<compile_context>
chip_gen: v7x
topology: tpu7x:2x2x1
jax: 0.10.0
libtpu: 0.0.40
codegen_flags: <defaults>
</compile_context>

<pallas_src>
import numpy as np
import jax
import jax.numpy as jnp
from jax.experimental import pallas as pl
from jax.experimental.pallas import tpu as pltpu


LANE = 128


def _round_up(x, m):
    return ((x + m - 1) // m) * m


# ---------------------------------------------------------------------------
# Fused kernel: (pooled patch rows) @ W_fused + b_fused -> sigmoid.
#   x : (tm, Pp)  bf16 gaussian-pooled patch rows, P zero-padded to 256 lanes
#   w : (Pp, Kp)  bf16 fused weight (w_embed @ w_cls), K zero-padded to 128
#   b : (1,  Kp)  f32  fused bias
#   o : (tm, Kp)  bf16 sigmoid(logits), lane-dense 2-D slab
# Accumulation and epilogue are f32 (v5e-friendly); only the store is bf16.
# ---------------------------------------------------------------------------
def fused_head_kernel(x_ref, w_ref, b_ref, o_ref):
    logits = jnp.dot(x_ref[...], w_ref[...],
                     preferred_element_type=jnp.float32) + b_ref[...]
    o_ref[...] = jax.nn.sigmoid(logits).astype(o_ref.dtype)


def fused_head(rows, w_fused, b_fused, *, tm=1024):
    """rows: (R, Pp) bf16. Returns padded (Rp, Kp) bf16 sigmoid outputs."""
    R, Pp = rows.shape
    Kp = w_fused.shape[1]

    # 16-aligned row tiles (bf16 sublane packing / f32 8-sublane output).
    tm = min(tm, _round_up(R, 16))
    # v7x megacore: ensure >= 2 grid steps on the parallel row axis when R
    # is big enough to split, so the second TensorCore is not idle.
    if R > 16 and _round_up(R, tm) // tm < 2:
        tm = max(16, _round_up(pl.cdiv(R, 2), 16))
    Rp = _round_up(R, tm)
    if Rp != R:
        rows = jnp.pad(rows, ((0, Rp - R), (0, 0)))

    out = pl.pallas_call(
        fused_head_kernel,
        out_shape=jax.ShapeDtypeStruct((Rp, Kp), jnp.bfloat16),
        grid=(Rp // tm,),
        in_specs=[
            pl.BlockSpec((tm, Pp), lambda i: (i, 0)),    # row tile (pipelined)
            pl.BlockSpec((Pp, Kp), lambda i: (0, 0)),    # resident fused weight
            pl.BlockSpec((1, Kp), lambda i: (0, 0)),     # resident fused bias
        ],
        out_specs=pl.BlockSpec((tm, Kp), lambda i: (i, 0)),
        compiler_params=pltpu.CompilerParams(
            dimension_semantics=("parallel",)),
    )(rows, w_fused, b_fused)
    return out


# ---------------------------------------------------------------------------
# Glue: gaussian image pooling, patch extraction, param folding/padding
# ---------------------------------------------------------------------------
def gaussian_window(m, std):
    n = jnp.arange(m, dtype=jnp.float32) - (m - 1) / 2.0
    return jnp.exp(-0.5 * (n / std) ** 2)


def make_sliding_cutouts(image, num_cutouts):
    # TODO(synk): real preprocess_image (resize/crop/normalize) is an external
    # dependency; substituted with deterministic rolled "sliding" cutouts.
    cuts = [jnp.roll(image, shift=i, axis=-1) for i in range(num_cutouts)]
    return jnp.stack(cuts, axis=1)  # (B, C_cut, 3, H, W)


def gaussian_pool_image(image, num_cutouts):
    """Fold the gaussian cutout pooling onto the image (exact: everything
    downstream up to the sigmoid is linear and commutes with the sum)."""
    gk = gaussian_window(num_cutouts, 1.0)
    gk = gk / gk.sum()
    pooled = jnp.zeros_like(image)
    for c in range(num_cutouts):
        pooled = pooled + gk[c] * jnp.roll(image, shift=c, axis=-1)
    return pooled


def extract_patches(x_nchw, patch):
    # NCHW -> (N, S, C*patch*patch), channel-major flatten (Conv2d order).
    N, C, H, W = x_nchw.shape
    gh, gw = H // patch, W // patch
    x = x_nchw.reshape(N, C, gh, patch, gw, patch)
    x = x.transpose(0, 2, 4, 1, 3, 5)               # (N, gh, gw, C, ph, pw)
    return x.reshape(N, gh * gw, C * patch * patch)


def fold_and_pad_params(params, P):
    """Fold embed+classifier in f32, then zero-pad P->mult of 256 and
    K->128 lanes; cast the fused weight to bf16 for the MXU."""
    K = params["w_cls"].shape[1]
    w_embed = params["w_embed"].astype(jnp.float32)
    b_embed = params["b_embed"].astype(jnp.float32)
    w_cls = params["w_cls"].astype(jnp.float32)
    b_cls = params["b_cls"].astype(jnp.float32)

    w_fused = w_embed @ w_cls                         # (P, K) f32
    b_fused = b_embed @ w_cls + b_cls                 # (1, K) f32

    Pp = _round_up(P, 256)    # 192 -> 256: lane-aligned, one full MXU pass
    Kp = _round_up(K, LANE)
    w_fused = jnp.pad(w_fused, ((0, Pp - P), (0, Kp - K))).astype(jnp.bfloat16)
    b_fused = jnp.pad(b_fused, ((0, 0), (0, Kp - K)))                  # f32
    return w_fused, b_fused, Pp, Kp


def emotion_classifier_forward(image, params, num_cutouts=4, patch=8):
    B = image.shape[0]
    K = params["w_cls"].shape[1]

    # Gaussian cutout pooling folded onto the image -> one patch extraction.
    pooled_img = gaussian_pool_image(image, num_cutouts)      # (B, 3, H, W)
    rows = extract_patches(pooled_img, patch)                 # (B, S, P)
    S, P = rows.shape[1], rows.shape[2]
    rows = rows.reshape(B * S, P)

    w_fused, b_fused, Pp, Kp = fold_and_pad_params(params, P)
    rows = jnp.pad(rows, ((0, 0), (0, Pp - P))).astype(jnp.bfloat16)

    # Single fused matmul + bias + sigmoid kernel; one merged slice of the
    # padded (Rp, Kp) bf16 slab.
    out = fused_head(rows, w_fused, b_fused)
    out = out[:B * S, :K].astype(jnp.float32).reshape(B, S, K)
    return jnp.squeeze(out)                                   # matches .squeeze()


# Pure-JAX reference following the ORIGINAL op order (embed each cutout in
# f32, gaussian-pool the hidden states, classify, sigmoid).
def reference_forward(image, params, num_cutouts=4, patch=8):
    B = image.shape[0]
    cut = make_sliding_cutouts(image, num_cutouts)
    cut = cut.reshape(B * num_cutouts, *cut.shape[2:])
    rows = extract_patches(cut, patch)
    hidden = rows @ params["w_embed"] + params["b_embed"][0]
    NC, S, D = hidden.shape
    hidden = hidden.reshape(B, num_cutouts, S, D)
    gk = gaussian_window(num_cutouts, 1.0)
    gk = gk / gk.sum()
    pooled = jnp.sum(hidden * gk[None, :, None, None], axis=1)
    logits = pooled @ params["w_cls"] + params["b_cls"][0]
    return jax.nn.sigmoid(jnp.squeeze(logits))


if __name__ == "__main__":
    key = jax.random.PRNGKey(0)
    k_img, k_we, k_be, k_wc, k_bc = jax.random.split(key, 5)

    B, C_in, H, W = 2, 3, 16, 16
    patch = 8
    num_cutouts = 4
    D = 32          # hidden size
    K = 8           # number of emotion classes
    P = C_in * patch * patch

    image = jax.random.normal(k_img, (B, C_in, H, W), dtype=jnp.float32)

    params = {
        "w_embed": jax.random.normal(k_we, (P, D), dtype=jnp.float32) * 0.05,
        "b_embed": jax.random.normal(k_be, (1, D), dtype=jnp.float32) * 0.05,
        "w_cls":   jax.random.normal(k_wc, (D, K), dtype=jnp.float32) * 0.1,
        "b_cls":   jax.random.normal(k_bc, (1, K), dtype=jnp.float32) * 0.1,
    }

    out = emotion_classifier_forward(image, params,
                                     num_cutouts=num_cutouts, patch=patch)
    out = jax.block_until_ready(out)

    ref = reference_forward(image, params, num_cutouts=num_cutouts, patch=patch)
    # Kernel uses a bf16 fused weight (folded in f32) and bf16 output store;
    # reference is full f32, so compare with a bf16-appropriate tolerance.
    np.testing.assert_allclose(np.asarray(out), np.asarray(ref),
                               rtol=2e-2, atol=2e-2)
    print("KERNEL_OK")
</pallas_src>

<mosaic_0001>
module attributes {stable_mosaic.version = 11 : i64} {
  func.func @fused_head_kernel(%arg0: i32, %arg1: memref<16x256xbf16, #tpu.memory_space<vmem>>, %arg2: memref<256x128xbf16, #tpu.memory_space<vmem>>, %arg3: memref<1x128xf32, #tpu.memory_space<vmem>>, %arg4: memref<16x128xbf16, #tpu.memory_space<vmem>>) attributes {dimension_semantics = [#tpu.dimension_semantics<parallel>], iteration_bounds = array<i64: 1>, scalar_prefetch = 0 : i64, scratch_operands = 0 : i64, tpu.core_type = #tpu.core_type<tc>, window_params = [{transform_indices = @transform_0, window_bounds = array<i64: 16, 256>}, {pipeline_mode = #tpu.pipeline_mode<synchronous>, transform_indices = @transform_1, window_bounds = array<i64: 256, 128>}, {pipeline_mode = #tpu.pipeline_mode<synchronous>, transform_indices = @transform_2, window_bounds = array<i64: 1, 128>}, {transform_indices = @transform_3, window_bounds = array<i64: 16, 128>}]} {
    %c0 = arith.constant 0 : index
    %c0_0 = arith.constant 0 : index
    %0 = vector.load %arg1[%c0, %c0_0] : memref<16x256xbf16, #tpu.memory_space<vmem>>, vector<16x256xbf16>
    %c0_1 = arith.constant 0 : index
    %c0_2 = arith.constant 0 : index
    %1 = vector.load %arg2[%c0_1, %c0_2] : memref<256x128xbf16, #tpu.memory_space<vmem>>, vector<256x128xbf16>
    %cst = arith.constant dense<0.000000e+00> : vector<16x128xf32>
    %2 = tpu.matmul %0, %1, %cst {dimension_numbers = #tpu.dot_dimension_numbers<[1], [0], [0], [1], [0, 0, 1, 1], [], []>} : vector<16x256xbf16>, vector<256x128xbf16>, vector<16x128xf32> -> vector<16x128xf32>
    %c0_3 = arith.constant 0 : index
    %c0_4 = arith.constant 0 : index
    %3 = vector.load %arg3[%c0_3, %c0_4] : memref<1x128xf32, #tpu.memory_space<vmem>>, vector<1x128xf32>
    %4 = vector.broadcast %3 : vector<1x128xf32> to vector<16x128xf32>
    %5 = arith.addf %2, %4 : vector<16x128xf32>
    %6 = arith.negf %5 : vector<16x128xf32>
    %7 = math.exp %6 : vector<16x128xf32>
    %cst_5 = arith.constant 1.000000e+00 : f32
    %8 = vector.broadcast %cst_5 : f32 to vector<16x128xf32>
    %9 = arith.addf %8, %7 : vector<16x128xf32>
    %10 = arith.divf %8, %9 : vector<16x128xf32>
    %11 = arith.truncf %10 : vector<16x128xf32> to vector<16x128xbf16>
    %c0_6 = arith.constant 0 : index
    %c0_7 = arith.constant 0 : index
    %12 = vector.load %arg4[%c0_6, %c0_7] : memref<16x128xbf16, #tpu.memory_space<vmem>>, vector<16x128xbf16>
    tpu.vector_store %arg4[%c0_6, %c0_7], %11 {strides = array<i32>} : memref<16x128xbf16, #tpu.memory_space<vmem>>, vector<16x128xbf16>,
    return
  }
  func.func @transform_0(%arg0: i32) -> (i32, i32) {
    %c0_i32 = arith.constant 0 : i32
    %c0_i32_0 = arith.constant 0 : i32
    return %arg0, %c0_i32 : i32, i32
  }
  func.func @transform_1(%arg0: i32) -> (i32, i32) {
    %c0_i32 = arith.constant 0 : i32
    %c0_i32_0 = arith.constant 0 : i32
    %c0_i32_1 = arith.constant 0 : i32
    return %c0_i32, %c0_i32_0 : i32, i32
  }
  func.func @transform_2(%arg0: i32) -> (i32, i32) {
    %c0_i32 = arith.constant 0 : i32
    %c0_i32_0 = arith.constant 0 : i32
    %c0_i32_1 = arith.constant 0 : i32
    return %c0_i32, %c0_i32_0 : i32, i32
  }
  func.func @transform_3(%arg0: i32) -> (i32, i32) {
    %c0_i32 = arith.constant 0 : i32
    %c0_i32_0 = arith.constant 0 : i32
    return %arg0, %c0_i32 : i32, i32
  }
}

</mosaic_0001>

<bundles_post_ra>
// kernel: tpu_custom_call.1
= control target key start
LH: loop header
LB: loop body
LE: loop exit
PB: predicated region body
PF: predicated region fallthrough
CT: control target
= control target key end

     0   :  { %8 = vsyncpa [#allocation3], 0  ;;  %s502_s0 = inlined_call_operand.hbm [shape: bf16[16,256], index: 0, kind: input, shape index: {}]   ;;  %s503_s1 = inlined_call_operand.hbm [shape: bf16[256,128], index: 1, kind: input, shape index: {}]   ;;  %s504_s2 = inlined_call_operand.vmem [shape: f32[1,128], index: 2, kind: input, shape index: {}]   ;;  %s505_s3 = inlined_call_operand.hbm [shape: bf16[16,128], index: 3, kind: output, shape index: {}]  }
   0x1   :  { %9 = vsyncpa [#allocation6], 0 }
   0x2   :  { %10 = vsyncpa [#allocation4], 0  ;;  %s430_s12 = smov [#allocation2]   ;;  %s358_s16 = scalar_lea.hbm %s502_s0, 256 }
   0x3   :  { %s16_s13 = sshll.u32 %s430_s12, 4  ;;  %p359_p0 = scmp.ne.s32.totalorder %s502_s0, %s358_s16  ;;  %s17_s13 = int_to_ptr.vmem [resolvable:$true] %s16_s13 }
   0x4   :  { %p362_p1 = scmp.lt.u32.totalorder %s358_s16, %s502_s0 }
   0x6   :  { %p364_p2 = pnand %p362_p1, %p359_p0 }
   0x8   :  { %367 = shalt.err (!%p364_p2)
}
   0x9   :  { %s368_s21 = scalar_lea.vmem %s17_s13, 256  ;;  %p373_p4 = scmp.lt.s32.totalorder %s17_s13, %s17_s13 }
   0xa   :  { %p369_p3 = scmp.ne.s32.totalorder %s17_s13, %s368_s21  ;;  %p374_p5 = scmp.lt.s32.totalorder %s368_s21, %s368_s21 }
   0xc   :  { %p375_p6 = por %p374_p5, %p373_p4 }
   0xe   :  { %p376_p7 = pnand %p375_p6, %p369_p3 }
  0x10   :  { %379 = shalt.err (!%p376_p7)
}
  0x11   :  { %s431_s22 = smov 128   ;;  %s432_s23 = smov 8  }
  0x12   :  { %22 = dma.hbm_to_vmem [thread:$0]  %s502_s0, 256, %s17_s13, [#allocation3], %s431_s22, %s431_s22, %s432_s23  }
  0x13   :  { %s433_s26 = smov [#allocation5]   ;;  %s380_s30 = scalar_lea.hbm %s503_s1, 2048 }
  0x14   :  { %s28_s27 = sshll.u32 %s433_s26, 4  ;;  %p381_p8 = scmp.ne.s32.totalorder %s503_s1, %s380_s30  ;;  %s29_s27 = int_to_ptr.vmem [resolvable:$true] %s28_s27 }
  0x15   :  { %p384_p9 = scmp.lt.u32.totalorder %s380_s30, %s503_s1 }
  0x17   :  { %p386_p10 = pnand %p384_p9, %p381_p8 }
  0x19   :  { %389 = shalt.err (!%p386_p10)
}
  0x1a   :  { %s390_s8 = scalar_lea.vmem %s29_s27, 2048  ;;  %p395_p12 = scmp.lt.s32.totalorder %s29_s27, %s29_s27 }
  0x1b   :  { %p391_p11 = scmp.ne.s32.totalorder %s29_s27, %s390_s8  ;;  %p396_p13 = scmp.lt.s32.totalorder %s390_s8, %s390_s8 }
  0x1d   :  { %p397_p0 = por %p396_p13, %p395_p12 }
  0x1f   :  { %p398_p1 = pnand %p397_p0, %p391_p11 }
  0x21   :  { %401 = shalt.err (!%p398_p1)
}
  0x22   :  { %s434_s0 = smov 64   ;;  %s435_s9 = smov 4  }
  0x23   :  { %34 = dma.hbm_to_vmem [thread:$0]  %s503_s1, 2048, %s29_s27, [#allocation6], %s434_s0, %s434_s0, %s435_s9  }
  0x24   :  { %424 = dma.done.wait [#allocation3], 256  }
  0x25   :  { %425 = vsyncadd [#allocation3], 4294967040 }
  0x26   :  { %426 = dma.done.wait [#allocation6], 2048  }
  0x27   :  { %427 = vsyncadd [#allocation6], 4294965248  ;;  %v331_v0 = vld [vmem:[#allocation5 + $0x40] sm:$0xff]   ;;  %v333_v2 = vld [vmem:[#allocation5 + $0x48] sm:$0xff]   ;;  %s436_s13 = smov [#allocation7]  }
  0x28   :  { %v332_v1 = vld [vmem:[#allocation5] sm:$0xff]   ;;  %302 = vmatprep.subr.bf16.mxu0 %v331_v0  ;;  %v334_v3 = vld [vmem:[#allocation5 + $0x8] sm:$0xff]   ;;  %v335_v4 = vld [vmem:[#allocation5 + $0x50] sm:$0xff]   ;;  %s259_s14 = sshll.u32 %s436_s13, 4  ;;  %s260_s14 = int_to_ptr.vmem [resolvable:$true] %s259_s14 }
  0x29   :  { %303 = vmatpush3.bf16.msra.mxu0 %v332_v1  ;;  %v336_v5 = vld [vmem:[#allocation5 + $0x10] sm:$0xff]   ;;  %v337_v6 = vld [vmem:[#allocation5 + $0x58] sm:$0xff]   ;;  %v339_v8 = vld [vmem:[#allocation5 + $0x60] sm:$0xff]   ;;  %p407_p3 = scmp.lt.s32.totalorder %s260_s14, %s260_s14 }
  0x2a   :  { %304 = vmatprep.subr.bf16.mxu0 %v333_v2  ;;  %v338_v7 = vld [vmem:[#allocation5 + $0x18] sm:$0xff]   ;;  %v340_v9 = vld [vmem:[#allocation5 + $0x20] sm:$0xff]   ;;  %v341_v10 = vld [vmem:[#allocation5 + $0x68] sm:$0xff]  }
  0x2b   :  { %v349_v11 = vld [vmem:[#allocation2 + $0x4] ss:$8 sps:$4 sm:$0xff]   ;;  %v342_v12 = vld [vmem:[#allocation5 + $0x28] sm:$0xff]   ;;  %v347_v17 = vld [vmem:[#allocation2] ss:$8 sps:$4 sm:$0xff]  }
  0x2c   :  { %223 = vmatprep.mubr.bf16.mxu0 %v349_v11  ;;  %v343_v13 = vld [vmem:[#allocation5 + $0x70] sm:$0xff]   ;;  %v345_v15 = vld [vmem:[#allocation5 + $0x78] sm:$0xff]  }
  0x2d   :  { %305 = vmatpush3.bf16.msra.mxu0 %v334_v3  ;;  %v344_v14 = vld [vmem:[#allocation5 + $0x30] sm:$0xff]   ;;  %v346_v16 = vld [vmem:[#allocation5 + $0x38] sm:$0xff]  }
  0x2e   :  { %306 = vmatprep.subr.bf16.mxu0 %v335_v4  ;;  %v272_v19 = vld [vmem:[%s504_s2] ss:$0 sm:$0xff]  ;;  %s402_s2 = scalar_lea.vmem %s260_s14, 128 }
  0x2f   :  { %p403_p2 = scmp.ne.s32.totalorder %s260_s14, %s402_s2  ;;  %p408_p4 = scmp.lt.s32.totalorder %s402_s2, %s402_s2 }
  0x31   :  { %307 = vmatpush3.bf16.msra.mxu0 %v336_v5  ;;  %p409_p5 = por %p408_p4, %p407_p3 }
  0x32   :  { %308 = vmatprep.subr.bf16.mxu0 %v337_v6 }
  0x33   :  { %p410_p6 = pnand %p409_p5, %p403_p2 }
  0x35   :  { %309 = vmatpush3.bf16.msra.mxu0 %v338_v7 }
  0x36   :  { %310 = vmatprep.subr.bf16.mxu0 %v339_v8 }
  0x39   :  { %311 = vmatpush3.bf16.msra.mxu0 %v340_v9 }
  0x3a   :  { %312 = vmatprep.subr.bf16.mxu0 %v341_v10 }
  0x3d   :  { %313 = vmatpush3.bf16.msra.mxu0 %v342_v12 }
  0x3e   :  { %314 = vmatprep.subr.bf16.mxu0 %v343_v13 }
  0x41   :  { %315 = vmatpush3.bf16.msra.mxu0 %v344_v14 }
  0x42   :  { %316 = vmatprep.subr.bf16.mxu0 %v345_v15 }
  0x45   :  { %317 = vmatpush3.bf16.msra.mxu0 %v346_v16 }
  0x48   :  { %224 = vmatmul.mubr.bf16.vlgmr.msra.gmra.mrb[0].mxu0 %v347_v17 }
 0x11b   :  { %v318_v18 = vpop.f32.mrb[0].mxu0 }
 0x11c   :  { %v319_v20 = vpop.f32.mrb[1].mxu0 }
 0x11d   :  { %v320_v21 = vadd.f32 %v319_v20, %v318_v18  ;;  %v321_v22 = vpop.f32.mrb[2].mxu0 }
 0x11e   :  { %v322_v23 = vpop.f32.mrb[3].mxu0 }
 0x11f   :  { %v226_v24 = vadd.f32 %v320_v21, %v272_v19  ;;  %v323_v25 = vadd.f32 %v322_v23, %v321_v22 }
 0x121   :  { %v291_v26 = vmul.f32 -1.442695, %v226_v24  ;;  %v229_v27 = vadd.f32 %v323_v25, %v272_v19 }
 0x123   :  { %350 = vpow2.f32 %v291_v26  ;;  %v292_v28 = vmul.f32 -1.442695, %v229_v27 }
 0x125   :  { %352 = vpow2.f32 %v292_v28 }
 0x12d   :  { %v351_v29 = vpop.eup %350 }
 0x12e   :  { %v238_v30 = vadd.f32 1.0, %v351_v29 }
 0x12f   :  { %v353_v31 = vpop.eup %352 }
 0x130   :  { %v239_v32 = vadd.f32 1.0, %v353_v31  ;;  %354 = vrcp.f32 %v238_v30 }
 0x132   :  { %356 = vrcp.f32 %v239_v32 }
 0x13a   :  { %v355_v33 = vpop.eup %354 }
 0x13c   :  { %v357_v34 = vpop.eup %356 }
 0x13d   :  { %v300_v35 = vpack.c.bf16 %v357_v34, %v355_v33 }
 0x13f   :  { %301 = vst [vmem:[#allocation7] sm:$0xff] %v300_v35  }
 0x140   :  { %413 = shalt.err (!%p410_p6)
}
 0x141   :  { %s414_s17 = scalar_lea.hbm %s505_s3, 128 }
 0x142   :  { %p415_p7 = scmp.ne.s32.totalorder %s505_s3, %s414_s17  ;;  %p418_p8 = scmp.lt.u32.totalorder %s414_s17, %s505_s3 }
 0x144   :  { %p420_p9 = pnand %p418_p8, %p415_p7 }
 0x146   :  { %423 = shalt.err (!%p420_p9)
}
 0x147   :  { %265 = dma.vmem_to_hbm [thread:$0]  %s260_s14, 128, %s505_s3, [#allocation4], %s434_s0, %s434_s0, %s435_s9  }
 0x148   :  { %428 = dma.done.wait [#allocation4], 128  }
 0x149   :  { %429 = vsyncadd [#allocation4], 4294967168 }
 0x14a   :  { %269 = vsyncpa [#allocation3], 1 }
 0x14b   :  { %270 = vsyncpa [#allocation6], 1 }
 0x14c   :  { %271 = vsyncpa [#allocation4], 1 }

</bundles_post_ra>
